<compile_context>
chip_gen: v7x
topology: tpu7x:2x2x1
jax: 0.10.0
libtpu: 0.0.40
codegen_flags: <defaults>
</compile_context>

<pallas_src>
import functools

import jax
import jax.numpy as jnp
from jax.experimental import pallas as pl
from jax.experimental.pallas import tpu as pltpu


LN_EPS = 1e-12


# ------------------------------ small helpers ------------------------------ #

def _pick_tile(dim, preferred, align):
    """Largest tile <= `preferred` that divides `dim` and is a multiple of `align`;
    falls back to the full dimension (a full-extent block is always legal)."""
    t = preferred
    while t >= align:
        if dim % t == 0:
            return t
        t //= 2
    return dim


def _layernorm_f32(x, gamma, beta):
    mean = jnp.mean(x, axis=-1, keepdims=True)
    xc = x - mean
    var = jnp.mean(xc * xc, axis=-1, keepdims=True)
    inv = jax.lax.rsqrt(var + jnp.float32(LN_EPS))
    return (xc * inv) * gamma + beta


def _gelu_f32(x):
    # TODO(synk): HF BERT default act is the exact erf-based GELU; tanh approx here.
    c = jnp.float32(0.7978845608028654)  # sqrt(2/pi)
    return 0.5 * x * (1.0 + jnp.tanh(c * (x + 0.044715 * x * x * x)))


# ----------------------------- Pallas kernels ------------------------------ #

def _ln_kernel(x_ref, g_ref, b_ref, o_ref):
    o_ref[...] = _layernorm_f32(x_ref[...], g_ref[...], b_ref[...])


def layernorm(x2d, gamma, beta):
    """LayerNorm over the last dim of a (M, H) f32 activation slab."""
    M, H = x2d.shape
    tm = _pick_tile(M, 256, 8)
    return pl.pallas_call(
        _ln_kernel,
        out_shape=jax.ShapeDtypeStruct((M, H), jnp.float32),
        grid=(M // tm,),
        in_specs=[
            pl.BlockSpec((tm, H), lambda i: (i, 0)),
            pl.BlockSpec((1, H), lambda i: (0, 0)),
            pl.BlockSpec((1, H), lambda i: (0, 0)),
        ],
        out_specs=pl.BlockSpec((tm, H), lambda i: (i, 0)),
        compiler_params=pltpu.CompilerParams(dimension_semantics=("parallel",)),
    )(x2d, gamma.reshape(1, H), beta.reshape(1, H))


def _dense_bias_kernel(x_ref, w_ref, b_ref, o_ref):
    # bf16 MXU feed, f32 accumulation, bias epilogue fused.
    x = x_ref[...].astype(jnp.bfloat16)
    y = jnp.dot(x, w_ref[...], preferred_element_type=jnp.float32)
    o_ref[...] = (y + b_ref[...]).astype(o_ref.dtype)


def dense_bias(x2d, w, b):
    """y = x2d @ w + b with a tiled (rows, cols) grid; w stored in bf16."""
    M, K = x2d.shape
    K2, N = w.shape
    assert K == K2
    tm = _pick_tile(M, 256, 8)
    tn = _pick_tile(N, 512, 128)
    cost = pl.CostEstimate(
        flops=int(2 * M * N * K),
        transcendentals=0,
        bytes_accessed=int(M * K * 4 + K * N * 2 + N * 4 + M * N * 4),
    )
    return pl.pallas_call(
        _dense_bias_kernel,
        out_shape=jax.ShapeDtypeStruct((M, N), jnp.float32),
        grid=(M // tm, N // tn),
        in_specs=[
            pl.BlockSpec((tm, K), lambda i, j: (i, 0)),
            pl.BlockSpec((K, tn), lambda i, j: (0, j)),
            pl.BlockSpec((1, tn), lambda i, j: (0, j)),
        ],
        out_specs=pl.BlockSpec((tm, tn), lambda i, j: (i, j)),
        compiler_params=pltpu.CompilerParams(
            dimension_semantics=("parallel", "parallel")),
        cost_estimate=cost,
    )(x2d, w, b.reshape(1, N))


def _attn_kernel(qkv_ref, m_ref, wo_ref, bo_ref, xres_ref, g_ref, bln_ref,
                 o_ref, ctx_ref, *, n_heads, head_dim, hidden):
    """Per-batch: MHSA (scale pre-folded into Q weights) + out-proj + residual + LN."""
    bias = m_ref[0]                                        # (1, S) additive mask
    for h in range(n_heads):                               # static unroll over heads
        q = qkv_ref[:, pl.ds(h * head_dim, head_dim)].astype(jnp.bfloat16)
        k = qkv_ref[:, pl.ds(hidden + h * head_dim, head_dim)].astype(jnp.bfloat16)
        v = qkv_ref[:, pl.ds(2 * hidden + h * head_dim, head_dim)].astype(jnp.bfloat16)
        s = jnp.dot(q, k.T, preferred_element_type=jnp.float32) + bias
        s = s - jnp.max(s, axis=-1, keepdims=True)
        p = jnp.exp(s)
        p = p * pl.reciprocal(jnp.sum(p, axis=-1, keepdims=True), approx=True)
        ctx_ref[:, pl.ds(h * head_dim, head_dim)] = jnp.dot(
            p.astype(jnp.bfloat16), v, preferred_element_type=jnp.float32)
    attn = jnp.dot(ctx_ref[...].astype(jnp.bfloat16), wo_ref[...],
                   preferred_element_type=jnp.float32) + bo_ref[...]
    o_ref[...] = _layernorm_f32(attn + xres_ref[...], g_ref[...], bln_ref[...])


def attention_block(qkv, mask_bias, wo, bo, x2d, gamma, beta, *,
                    batch, seq, n_heads, head_dim):
    """qkv: (B*S, 3H); mask_bias: (B, 1, S); x2d residual: (B*S, H) -> new (B*S, H)."""
    M, H = x2d.shape
    H3 = qkv.shape[1]
    assert M == batch * seq and H3 == 3 * H
    cost = pl.CostEstimate(
        flops=int(4 * batch * n_heads * seq * seq * head_dim + 2 * M * H * H),
        transcendentals=int(batch * n_heads * seq * seq),
        bytes_accessed=int(qkv.size * 4 + 2 * x2d.size * 4 + wo.size * 2
                           + mask_bias.size * 4),
    )
    return pl.pallas_call(
        functools.partial(_attn_kernel, n_heads=n_heads, head_dim=head_dim, hidden=H),
        out_shape=jax.ShapeDtypeStruct((M, H), jnp.float32),
        grid=(batch,),
        in_specs=[
            pl.BlockSpec((seq, H3), lambda b: (b, 0)),      # QKV rows of this batch
            pl.BlockSpec((1, 1, seq), lambda b: (b, 0, 0)),  # additive mask bias
            pl.BlockSpec((H, H), lambda b: (0, 0)),          # Wo (bf16)
            pl.BlockSpec((1, H), lambda b: (0, 0)),          # bo
            pl.BlockSpec((seq, H), lambda b: (b, 0)),        # residual rows
            pl.BlockSpec((1, H), lambda b: (0, 0)),          # LN gamma
            pl.BlockSpec((1, H), lambda b: (0, 0)),          # LN beta
        ],
        out_specs=pl.BlockSpec((seq, H), lambda b: (b, 0)),
        scratch_shapes=[pltpu.VMEM((seq, H), jnp.float32)],  # per-batch context
        compiler_params=pltpu.CompilerParams(dimension_semantics=("parallel",)),
        cost_estimate=cost,
    )(qkv, mask_bias, wo, bo.reshape(1, H), x2d, gamma.reshape(1, H),
      beta.reshape(1, H))


def _ffn_kernel(x_ref, w1_ref, b1_ref, w2_ref, b2_ref, g_ref, bln_ref, o_ref):
    x = x_ref[...]                                              # (tm, H) f32
    h = jnp.dot(x.astype(jnp.bfloat16), w1_ref[...],
                preferred_element_type=jnp.float32) + b1_ref[...]
    h = _gelu_f32(h)                                            # stays in VMEM/regs
    y = jnp.dot(h.astype(jnp.bfloat16), w2_ref[...],
                preferred_element_type=jnp.float32) + b2_ref[...]
    o_ref[...] = _layernorm_f32(y + x, g_ref[...], bln_ref[...])


def ffn_block(x2d, w1, b1, w2, b2, gamma, beta):
    """Fused GELU FFN + residual + LayerNorm; intermediate never written to HBM."""
    M, H = x2d.shape
    I = w1.shape[1]
    tm = _pick_tile(M, 256, 8)
    # TODO(synk): on v7x (64 MiB VMEM) also tile the intermediate dim I for very
    # large configs; full (H, I)/(I, H) bf16 weight blocks fit comfortably for BERT.
    cost = pl.CostEstimate(
        flops=int(4 * M * H * I),
        transcendentals=int(M * I),
        bytes_accessed=int(2 * M * H * 4 + 2 * H * I * 2 + (I + H) * 4),
    )
    return pl.pallas_call(
        _ffn_kernel,
        out_shape=jax.ShapeDtypeStruct((M, H), jnp.float32),
        grid=(M // tm,),
        in_specs=[
            pl.BlockSpec((tm, H), lambda i: (i, 0)),
            pl.BlockSpec((H, I), lambda i: (0, 0)),
            pl.BlockSpec((1, I), lambda i: (0, 0)),
            pl.BlockSpec((I, H), lambda i: (0, 0)),
            pl.BlockSpec((1, H), lambda i: (0, 0)),
            pl.BlockSpec((1, H), lambda i: (0, 0)),
            pl.BlockSpec((1, H), lambda i: (0, 0)),
        ],
        out_specs=pl.BlockSpec((tm, H), lambda i: (i, 0)),
        compiler_params=pltpu.CompilerParams(dimension_semantics=("parallel",)),
        cost_estimate=cost,
    )(x2d, w1, b1.reshape(1, I), w2, b2.reshape(1, H),
      gamma.reshape(1, H), beta.reshape(1, H))


# ----------------------------- Parameter setup ------------------------------ #

def init_bert_params(key, vocab_size, hidden, n_layers, intermediate,
                     max_pos, n_heads, type_vocab=2):
    std = 0.02
    head_dim = hidden // n_heads
    q_scale = 1.0 / float(head_dim) ** 0.5        # folded into the Q projection
    keys = iter(jax.random.split(key, 8 * n_layers + 8))

    def nrm(shape):
        return jax.random.normal(next(keys), shape, jnp.float32) * std

    params = {
        "word_emb": nrm((vocab_size, hidden)),
        "pos_emb": nrm((max_pos, hidden)),
        "type_emb": nrm((type_vocab, hidden)),
        "emb_ln_g": jnp.ones((hidden,), jnp.float32),
        "emb_ln_b": jnp.zeros((hidden,), jnp.float32),
        "layers": [],
    }
    for _ in range(n_layers):
        wq, wk, wv = nrm((hidden, hidden)), nrm((hidden, hidden)), nrm((hidden, hidden))
        bq = jnp.zeros((hidden,), jnp.float32)
        bk = jnp.zeros((hidden,), jnp.float32)
        bv = jnp.zeros((hidden,), jnp.float32)
        # Fused QKV weight with the attention scale pre-folded into the Q slice.
        wqkv = jnp.concatenate([wq * q_scale, wk, wv], axis=1).astype(jnp.bfloat16)
        bqkv = jnp.concatenate([bq * q_scale, bk, bv], axis=0)
        params["layers"].append({
            "wqkv": wqkv, "bqkv": bqkv,
            "wo": nrm((hidden, hidden)).astype(jnp.bfloat16),
            "bo": jnp.zeros((hidden,), jnp.float32),
            "ln1_g": jnp.ones((hidden,), jnp.float32),
            "ln1_b": jnp.zeros((hidden,), jnp.float32),
            "w1": nrm((hidden, intermediate)).astype(jnp.bfloat16),
            "b1": jnp.zeros((intermediate,), jnp.float32),
            "w2": nrm((intermediate, hidden)).astype(jnp.bfloat16),
            "b2": jnp.zeros((hidden,), jnp.float32),
            "ln2_g": jnp.ones((hidden,), jnp.float32),
            "ln2_b": jnp.zeros((hidden,), jnp.float32),
        })
    return params


# ----------------------------- Forward pass -------------------------------- #

def bert_text_encoder_forward(params, input_ids, attention_mask=None, *, n_heads=2):
    """Returns CLS token embedding [batch, hidden] (== last_hidden_state[:, 0, :])."""
    B, S = input_ids.shape
    H = params["word_emb"].shape[1]
    DH = H // n_heads
    M = B * S

    if attention_mask is None:
        attention_mask = jnp.ones((B, S), jnp.int32)

    # Embedding lookups (gather) stay in XLA glue; token_type_ids == 0 everywhere.
    we = jnp.take(params["word_emb"], input_ids, axis=0)          # (B, S, H)
    pe = params["pos_emb"][:S][None, :, :]                        # (1, S, H)
    te = params["type_emb"][0][None, None, :]                     # (1, 1, H)
    emb = (we + pe + te).astype(jnp.float32)

    x2d = layernorm(emb.reshape(M, H), params["emb_ln_g"], params["emb_ln_b"])

    # Extended attention mask: (1 - mask) * -10000, broadcast over heads/queries.
    mask_bias = ((1.0 - attention_mask.astype(jnp.float32)) * -10000.0).reshape(B, 1, S)

    for lyr in params["layers"]:
        # --- self-attention sublayer (2 fused kernels) ---
        qkv = dense_bias(x2d, lyr["wqkv"], lyr["bqkv"])           # (M, 3H)
        x2d = attention_block(qkv, mask_bias, lyr["wo"], lyr["bo"], x2d,
                              lyr["ln1_g"], lyr["ln1_b"],
                              batch=B, seq=S, n_heads=n_heads, head_dim=DH)
        # --- feed-forward sublayer (1 fused kernel) ---
        x2d = ffn_block(x2d, lyr["w1"], lyr["b1"], lyr["w2"], lyr["b2"],
                        lyr["ln2_g"], lyr["ln2_b"])

    last_hidden_state = x2d.reshape(B, S, H)
    return last_hidden_state[:, 0, :]   # CLS token embedding


# --------------------------------- Main ------------------------------------ #

if __name__ == "__main__":
    # Small synthetic BERT config (stand-in for bert-base-uncased).
    B, S, H, NH, I, L = 2, 8, 32, 2, 64, 2
    VOCAB, MAX_POS = 100, 16

    key = jax.random.PRNGKey(0)
    pkey, ikey = jax.random.split(key)

    params = init_bert_params(pkey, VOCAB, H, L, I, MAX_POS, NH)
    input_ids = jax.random.randint(ikey, (B, S), 0, VOCAB, dtype=jnp.int32)
    attention_mask = jnp.ones((B, S), jnp.int32).at[1, 6:].set(0)  # ragged mask

    fwd = jax.jit(functools.partial(bert_text_encoder_forward, n_heads=NH))
    cls = fwd(params, input_ids, attention_mask)
    cls = jax.block_until_ready(cls)
    assert cls.shape == (B, H) and cls.dtype == jnp.float32
    print("KERNEL_OK")
</pallas_src>

<mosaic_0001>
module attributes {stable_mosaic.version = 11 : i64} {
  func.func @_dense_bias_kernel(%arg0: i32, %arg1: i32, %arg2: memref<16x32xf32, #tpu.memory_space<vmem>>, %arg3: memref<32x96xbf16, #tpu.memory_space<vmem>>, %arg4: memref<1x96xf32, #tpu.memory_space<vmem>>, %arg5: memref<16x96xf32, #tpu.memory_space<vmem>>) attributes {dimension_semantics = [#tpu.dimension_semantics<parallel>, #tpu.dimension_semantics<parallel>], iteration_bounds = array<i64: 1, 1>, scalar_prefetch = 0 : i64, scratch_operands = 0 : i64, tpu.core_type = #tpu.core_type<tc>, window_params = [{transform_indices = @transform_0, window_bounds = array<i64: 16, 32>}, {transform_indices = @transform_1, window_bounds = array<i64: 32, 96>}, {transform_indices = @transform_2, window_bounds = array<i64: 1, 96>}, {transform_indices = @transform_3, window_bounds = array<i64: 16, 96>}]} {
    %c0 = arith.constant 0 : index
    %c0_0 = arith.constant 0 : index
    %0 = vector.load %arg2[%c0, %c0_0] : memref<16x32xf32, #tpu.memory_space<vmem>>, vector<16x32xf32>
    %1 = arith.truncf %0 : vector<16x32xf32> to vector<16x32xbf16>
    %c0_1 = arith.constant 0 : index
    %c0_2 = arith.constant 0 : index
    %2 = vector.load %arg3[%c0_1, %c0_2] : memref<32x96xbf16, #tpu.memory_space<vmem>>, vector<32x96xbf16>
    %cst = arith.constant dense<0.000000e+00> : vector<16x96xf32>
    %3 = tpu.matmul %1, %2, %cst {dimension_numbers = #tpu.dot_dimension_numbers<[1], [0], [0], [1], [0, 0, 1, 1], [], []>} : vector<16x32xbf16>, vector<32x96xbf16>, vector<16x96xf32> -> vector<16x96xf32>
    %c0_3 = arith.constant 0 : index
    %c0_4 = arith.constant 0 : index
    %4 = vector.load %arg4[%c0_3, %c0_4] : memref<1x96xf32, #tpu.memory_space<vmem>>, vector<1x96xf32>
    %5 = vector.broadcast %4 : vector<1x96xf32> to vector<16x96xf32>
    %6 = arith.addf %3, %5 : vector<16x96xf32>
    %c0_5 = arith.constant 0 : index
    %c0_6 = arith.constant 0 : index
    %7 = vector.load %arg5[%c0_5, %c0_6] : memref<16x96xf32, #tpu.memory_space<vmem>>, vector<16x96xf32>
    tpu.vector_store %arg5[%c0_5, %c0_6], %6 {strides = array<i32>} : memref<16x96xf32, #tpu.memory_space<vmem>>, vector<16x96xf32>,
    return
  }
  func.func @transform_0(%arg0: i32, %arg1: i32) -> (i32, i32) {
    %c0_i32 = arith.constant 0 : i32
    %c0_i32_0 = arith.constant 0 : i32
    return %arg0, %c0_i32 : i32, i32
  }
  func.func @transform_1(%arg0: i32, %arg1: i32) -> (i32, i32) {
    %c0_i32 = arith.constant 0 : i32
    %c0_i32_0 = arith.constant 0 : i32
    return %c0_i32, %arg1 : i32, i32
  }
  func.func @transform_2(%arg0: i32, %arg1: i32) -> (i32, i32) {
    %c0_i32 = arith.constant 0 : i32
    %c0_i32_0 = arith.constant 0 : i32
    return %c0_i32, %arg1 : i32, i32
  }
  func.func @transform_3(%arg0: i32, %arg1: i32) -> (i32, i32) {
    %c0_i32 = arith.constant 0 : i32
    return %arg0, %arg1 : i32, i32
  }
}

module attributes {stable_mosaic.version = 11 : i64} {
  func.func @_ln_kernel(%arg0: i32, %arg1: memref<16x32xf32, #tpu.memory_space<vmem>>, %arg2: memref<1x32xf32, #tpu.memory_space<vmem>>, %arg3: memref<1x32xf32, #tpu.memory_space<vmem>>, %arg4: memref<16x32xf32, #tpu.memory_space<vmem>>) attributes {dimension_semantics = [#tpu.dimension_semantics<parallel>], iteration_bounds = array<i64: 1>, scalar_prefetch = 0 : i64, scratch_operands = 0 : i64, tpu.core_type = #tpu.core_type<tc>, window_params = [{transform_indices = @transform_0, window_bounds = array<i64: 16, 32>}, {pipeline_mode = #tpu.pipeline_mode<synchronous>, transform_indices = @transform_1, window_bounds = array<i64: 1, 32>}, {pipeline_mode = #tpu.pipeline_mode<synchronous>, transform_indices = @transform_2, window_bounds = array<i64: 1, 32>}, {transform_indices = @transform_3, window_bounds = array<i64: 16, 32>}]} {
    %c0 = arith.constant 0 : index
    %c0_0 = arith.constant 0 : index
    %0 = vector.load %arg1[%c0, %c0_0] : memref<16x32xf32, #tpu.memory_space<vmem>>, vector<16x32xf32>
    %c0_1 = arith.constant 0 : index
    %c0_2 = arith.constant 0 : index
    %1 = vector.load %arg2[%c0_1, %c0_2] : memref<1x32xf32, #tpu.memory_space<vmem>>, vector<1x32xf32>
    %c0_3 = arith.constant 0 : index
    %c0_4 = arith.constant 0 : index
    %2 = vector.load %arg3[%c0_3, %c0_4] : memref<1x32xf32, #tpu.memory_space<vmem>>, vector<1x32xf32>
    %cst = arith.constant dense<0.000000e+00> : vector<16xf32>
    %3 = vector.multi_reduction <add>, %0, %cst [1] : vector<16x32xf32> to vector<16xf32>
    %4 = vector.shape_cast %3 : vector<16xf32> to vector<16x1xf32>
    %cst_5 = arith.constant 3.200000e+01 : f32
    %5 = vector.broadcast %cst_5 : f32 to vector<16x1xf32>
    %6 = arith.divf %4, %5 : vector<16x1xf32>
    %7 = vector.broadcast %6 : vector<16x1xf32> to vector<16x32xf32>
    %8 = arith.subf %0, %7 : vector<16x32xf32>
    %9 = arith.mulf %8, %8 : vector<16x32xf32>
    %cst_6 = arith.constant dense<0.000000e+00> : vector<16xf32>
    %10 = vector.multi_reduction <add>, %9, %cst_6 [1] : vector<16x32xf32> to vector<16xf32>
    %11 = vector.shape_cast %10 : vector<16xf32> to vector<16x1xf32>
    %cst_7 = arith.constant 3.200000e+01 : f32
    %12 = vector.broadcast %cst_7 : f32 to vector<16x1xf32>
    %13 = arith.divf %11, %12 : vector<16x1xf32>
    %cst_8 = arith.constant 9.99999996E-13 : f32
    %14 = vector.broadcast %cst_8 : f32 to vector<16x1xf32>
    %15 = arith.addf %13, %14 : vector<16x1xf32>
    %16 = math.rsqrt %15 : vector<16x1xf32>
    %17 = vector.broadcast %16 : vector<16x1xf32> to vector<16x32xf32>
    %18 = arith.mulf %8, %17 : vector<16x32xf32>
    %19 = vector.broadcast %1 : vector<1x32xf32> to vector<16x32xf32>
    %20 = arith.mulf %18, %19 : vector<16x32xf32>
    %21 = vector.broadcast %2 : vector<1x32xf32> to vector<16x32xf32>
    %22 = arith.addf %20, %21 : vector<16x32xf32>
    %c0_9 = arith.constant 0 : index
    %c0_10 = arith.constant 0 : index
    %23 = vector.load %arg4[%c0_9, %c0_10] : memref<16x32xf32, #tpu.memory_space<vmem>>, vector<16x32xf32>
    tpu.vector_store %arg4[%c0_9, %c0_10], %22 {strides = array<i32>} : memref<16x32xf32, #tpu.memory_space<vmem>>, vector<16x32xf32>,
    return
  }
  func.func @transform_0(%arg0: i32) -> (i32, i32) {
    %c0_i32 = arith.constant 0 : i32
    %c0_i32_0 = arith.constant 0 : i32
    return %arg0, %c0_i32 : i32, i32
  }
  func.func @transform_1(%arg0: i32) -> (i32, i32) {
    %c0_i32 = arith.constant 0 : i32
    %c0_i32_0 = arith.constant 0 : i32
    %c0_i32_1 = arith.constant 0 : i32
    return %c0_i32, %c0_i32_0 : i32, i32
  }
  func.func @transform_2(%arg0: i32) -> (i32, i32) {
    %c0_i32 = arith.constant 0 : i32
    %c0_i32_0 = arith.constant 0 : i32
    %c0_i32_1 = arith.constant 0 : i32
    return %c0_i32, %c0_i32_0 : i32, i32
  }
  func.func @transform_3(%arg0: i32) -> (i32, i32) {
    %c0_i32 = arith.constant 0 : i32
    %c0_i32_0 = arith.constant 0 : i32
    return %arg0, %c0_i32 : i32, i32
  }
}

module attributes {stable_mosaic.version = 11 : i64} {
  func.func @_attn_kernel(%arg0: i32, %arg1: memref<8x96xf32, #tpu.memory_space<vmem>>, %arg2: memref<1x1x8xf32, #tpu.memory_space<vmem>>, %arg3: memref<32x32xbf16, #tpu.memory_space<vmem>>, %arg4: memref<1x32xf32, #tpu.memory_space<vmem>>, %arg5: memref<8x32xf32, #tpu.memory_space<vmem>>, %arg6: memref<1x32xf32, #tpu.memory_space<vmem>>, %arg7: memref<1x32xf32, #tpu.memory_space<vmem>>, %arg8: memref<8x32xf32, #tpu.memory_space<vmem>>, %arg9: memref<8x32xf32, #tpu.memory_space<vmem>>) attributes {dimension_semantics = [#tpu.dimension_semantics<parallel>], iteration_bounds = array<i64: 2>, scalar_prefetch = 0 : i64, scratch_operands = 1 : i64, tpu.core_type = #tpu.core_type<tc>, window_params = [{transform_indices = @transform_0, window_bounds = array<i64: 8, 96>}, {transform_indices = @transform_1, window_bounds = array<i64: 1, 1, 8>}, {pipeline_mode = #tpu.pipeline_mode<synchronous>, transform_indices = @transform_2, window_bounds = array<i64: 32, 32>}, {pipeline_mode = #tpu.pipeline_mode<synchronous>, transform_indices = @transform_3, window_bounds = array<i64: 1, 32>}, {transform_indices = @transform_4, window_bounds = array<i64: 8, 32>}, {pipeline_mode = #tpu.pipeline_mode<synchronous>, transform_indices = @transform_5, window_bounds = array<i64: 1, 32>}, {pipeline_mode = #tpu.pipeline_mode<synchronous>, transform_indices = @transform_6, window_bounds = array<i64: 1, 32>}, {transform_indices = @transform_7, window_bounds = array<i64: 8, 32>}]} {
    %c0 = arith.constant 0 : index
    %c0_0 = arith.constant 0 : index
    %c0_1 = arith.constant 0 : index
    %0 = vector.load %arg2[%c0, %c0_0, %c0_1] : memref<1x1x8xf32, #tpu.memory_space<vmem>>, vector<1x1x8xf32>
    %1 = vector.shape_cast %0 : vector<1x1x8xf32> to vector<1x8xf32>
    %c0_2 = arith.constant 0 : index
    %c0_3 = arith.constant 0 : index
    %2 = vector.load %arg1[%c0_2, %c0_3] : memref<8x96xf32, #tpu.memory_space<vmem>>, vector<8x16xf32>
    %3 = arith.truncf %2 : vector<8x16xf32> to vector<8x16xbf16>
    %c0_4 = arith.constant 0 : index
    %c32 = arith.constant 32 : index
    %4 = vector.load %arg1[%c0_4, %c32] : memref<8x96xf32, #tpu.memory_space<vmem>>, vector<8x16xf32>
    %5 = arith.truncf %4 : vector<8x16xf32> to vector<8x16xbf16>
    %c0_5 = arith.constant 0 : index
    %c64 = arith.constant 64 : index
    %6 = vector.load %arg1[%c0_5, %c64] : memref<8x96xf32, #tpu.memory_space<vmem>>, vector<8x16xf32>
    %7 = arith.truncf %6 : vector<8x16xf32> to vector<8x16xbf16>
    %8 = tpu.transpose %5, [1, 0] : vector<8x16xbf16> -> vector<16x8xbf16>
    %cst = arith.constant dense<0.000000e+00> : vector<8x8xf32>
    %9 = tpu.matmul %3, %8, %cst {dimension_numbers = #tpu.dot_dimension_numbers<[1], [0], [0], [1], [0, 0, 1, 1], [], []>} : vector<8x16xbf16>, vector<16x8xbf16>, vector<8x8xf32> -> vector<8x8xf32>
    %10 = vector.broadcast %1 : vector<1x8xf32> to vector<8x8xf32>
    %11 = arith.addf %9, %10 : vector<8x8xf32>
    %cst_6 = arith.constant dense<0xFF800000> : vector<8xf32>
    %12 = vector.multi_reduction <maximumf>, %11, %cst_6 [1] : vector<8x8xf32> to vector<8xf32>
    %13 = vector.shape_cast %12 : vector<8xf32> to vector<8x1xf32>
    %14 = vector.broadcast %13 : vector<8x1xf32> to vector<8x8xf32>
    %15 = arith.subf %11, %14 : vector<8x8xf32>
    %16 = math.exp %15 : vector<8x8xf32>
    %cst_7 = arith.constant dense<0.000000e+00> : vector<8xf32>
    %17 = vector.multi_reduction <add>, %16, %cst_7 [1] : vector<8x8xf32> to vector<8xf32>
    %18 = vector.shape_cast %17 : vector<8xf32> to vector<8x1xf32>
    %19 = tpu.reciprocal %18 {approx = true} : vector<8x1xf32> -> vector<8x1xf32>
    %20 = vector.broadcast %19 : vector<8x1xf32> to vector<8x8xf32>
    %21 = arith.mulf %16, %20 : vector<8x8xf32>
    %22 = arith.truncf %21 : vector<8x8xf32> to vector<8x8xbf16>
    %cst_8 = arith.constant dense<0.000000e+00> : vector<8x16xf32>
    %23 = tpu.matmul %22, %7, %cst_8 {dimension_numbers = #tpu.dot_dimension_numbers<[1], [0], [0], [1], [0, 0, 1, 1], [], []>} : vector<8x8xbf16>, vector<8x16xbf16>, vector<8x16xf32> -> vector<8x16xf32>
    %c0_9 = arith.constant 0 : index
    %c0_10 = arith.constant 0 : index
    %24 = vector.load %arg9[%c0_9, %c0_10] : memref<8x32xf32, #tpu.memory_space<vmem>>, vector<8x16xf32>
    tpu.vector_store %arg9[%c0_9, %c0_10], %23 {strides = array<i32>} : memref<8x32xf32, #tpu.memory_space<vmem>>, vector<8x16xf32>,
    %c0_11 = arith.constant 0 : index
    %c16 = arith.constant 16 : index
    %25 = vector.load %arg1[%c0_11, %c16] : memref<8x96xf32, #tpu.memory_space<vmem>>, vector<8x16xf32>
    %26 = arith.truncf %25 : vector<8x16xf32> to vector<8x16xbf16>
    %c0_12 = arith.constant 0 : index
    %c48 = arith.constant 48 : index
    %27 = vector.load %arg1[%c0_12, %c48] : memref<8x96xf32, #tpu.memory_space<vmem>>, vector<8x16xf32>
    %28 = arith.truncf %27 : vector<8x16xf32> to vector<8x16xbf16>
    %c0_13 = arith.constant 0 : index
    %c80 = arith.constant 80 : index
    %29 = vector.load %arg1[%c0_13, %c80] : memref<8x96xf32, #tpu.memory_space<vmem>>, vector<8x16xf32>
    %30 = arith.truncf %29 : vector<8x16xf32> to vector<8x16xbf16>
    %31 = tpu.transpose %28, [1, 0] : vector<8x16xbf16> -> vector<16x8xbf16>
    %cst_14 = arith.constant dense<0.000000e+00> : vector<8x8xf32>
    %32 = tpu.matmul %26, %31, %cst_14 {dimension_numbers = #tpu.dot_dimension_numbers<[1], [0], [0], [1], [0, 0, 1, 1], [], []>} : vector<8x16xbf16>, vector<16x8xbf16>, vector<8x8xf32> -> vector<8x8xf32>
    %33 = vector.broadcast %1 : vector<1x8xf32> to vector<8x8xf32>
    %34 = arith.addf %32, %33 : vector<8x8xf32>
    %cst_15 = arith.constant dense<0xFF800000> : vector<8xf32>
    %35 = vector.multi_reduction <maximumf>, %34, %cst_15 [1] : vector<8x8xf32> to vector<8xf32>
    %36 = vector.shape_cast %35 : vector<8xf32> to vector<8x1xf32>
    %37 = vector.broadcast %36 : vector<8x1xf32> to vector<8x8xf32>
    %38 = arith.subf %34, %37 : vector<8x8xf32>
    %39 = math.exp %38 : vector<8x8xf32>
    %cst_16 = arith.constant dense<0.000000e+00> : vector<8xf32>
    %40 = vector.multi_reduction <add>, %39, %cst_16 [1] : vector<8x8xf32> to vector<8xf32>
    %41 = vector.shape_cast %40 : vector<8xf32> to vector<8x1xf32>
    %42 = tpu.reciprocal %41 {approx = true} : vector<8x1xf32> -> vector<8x1xf32>
    %43 = vector.broadcast %42 : vector<8x1xf32> to vector<8x8xf32>
    %44 = arith.mulf %39, %43 : vector<8x8xf32>
    %45 = arith.truncf %44 : vector<8x8xf32> to vector<8x8xbf16>
    %cst_17 = arith.constant dense<0.000000e+00> : vector<8x16xf32>
    %46 = tpu.matmul %45, %30, %cst_17 {dimension_numbers = #tpu.dot_dimension_numbers<[1], [0], [0], [1], [0, 0, 1, 1], [], []>} : vector<8x8xbf16>, vector<8x16xbf16>, vector<8x16xf32> -> vector<8x16xf32>
    %c0_18 = arith.constant 0 : index
    %c16_19 = arith.constant 16 : index
    %47 = vector.load %arg9[%c0_18, %c16_19] : memref<8x32xf32, #tpu.memory_space<vmem>>, vector<8x16xf32>
    tpu.vector_store %arg9[%c0_18, %c16_19], %46 {strides = array<i32>} : memref<8x32xf32, #tpu.memory_space<vmem>>, vector<8x16xf32>,
    %c0_20 = arith.constant 0 : index
    %c0_21 = arith.constant 0 : index
    %48 = vector.load %arg9[%c0_20, %c0_21] : memref<8x32xf32, #tpu.memory_space<vmem>>, vector<8x32xf32>
    %49 = arith.truncf %48 : vector<8x32xf32> to vector<8x32xbf16>
    %c0_22 = arith.constant 0 : index
    %c0_23 = arith.constant 0 : index
    %50 = vector.load %arg3[%c0_22, %c0_23] : memref<32x32xbf16, #tpu.memory_space<vmem>>, vector<32x32xbf16>
    %cst_24 = arith.constant dense<0.000000e+00> : vector<8x32xf32>
    %51 = tpu.matmul %49, %50, %cst_24 {dimension_numbers = #tpu.dot_dimension_numbers<[1], [0], [0], [1], [0, 0, 1, 1], [], []>} : vector<8x32xbf16>, vector<32x32xbf16>, vector<8x32xf32> -> vector<8x32xf32>
    %c0_25 = arith.constant 0 : index
    %c0_26 = arith.constant 0 : index
    %52 = vector.load %arg4[%c0_25, %c0_26] : memref<1x32xf32, #tpu.memory_space<vmem>>, vector<1x32xf32>
    %53 = vector.broadcast %52 : vector<1x32xf32> to vector<8x32xf32>
    %54 = arith.addf %51, %53 : vector<8x32xf32>
    %c0_27 = arith.constant 0 : index
    %c0_28 = arith.constant 0 : index
    %55 = vector.load %arg5[%c0_27, %c0_28] : memref<8x32xf32, #tpu.memory_space<vmem>>, vector<8x32xf32>
    %56 = arith.addf %54, %55 : vector<8x32xf32>
    %c0_29 = arith.constant 0 : index
    %c0_30 = arith.constant 0 : index
    %57 = vector.load %arg6[%c0_29, %c0_30] : memref<1x32xf32, #tpu.memory_space<vmem>>, vector<1x32xf32>
    %c0_31 = arith.constant 0 : index
    %c0_32 = arith.constant 0 : index
    %58 = vector.load %arg7[%c0_31, %c0_32] : memref<1x32xf32, #tpu.memory_space<vmem>>, vector<1x32xf32>
    %cst_33 = arith.constant dense<0.000000e+00> : vector<8xf32>
    %59 = vector.multi_reduction <add>, %56, %cst_33 [1] : vector<8x32xf32> to vector<8xf32>
    %60 = vector.shape_cast %59 : vector<8xf32> to vector<8x1xf32>
    %cst_34 = arith.constant 3.200000e+01 : f32
    %61 = vector.broadcast %cst_34 : f32 to vector<8x1xf32>
    %62 = arith.divf %60, %61 : vector<8x1xf32>
    %63 = vector.broadcast %62 : vector<8x1xf32> to vector<8x32xf32>
    %64 = arith.subf %56, %63 : vector<8x32xf32>
    %65 = arith.mulf %64, %64 : vector<8x32xf32>
    %cst_35 = arith.constant dense<0.000000e+00> : vector<8xf32>
    %66 = vector.multi_reduction <add>, %65, %cst_35 [1] : vector<8x32xf32> to vector<8xf32>
    %67 = vector.shape_cast %66 : vector<8xf32> to vector<8x1xf32>
    %cst_36 = arith.constant 3.200000e+01 : f32
    %68 = vector.broadcast %cst_36 : f32 to vector<8x1xf32>
    %69 = arith.divf %67, %68 : vector<8x1xf32>
    %cst_37 = arith.constant 9.99999996E-13 : f32
    %70 = vector.broadcast %cst_37 : f32 to vector<8x1xf32>
    %71 = arith.addf %69, %70 : vector<8x1xf32>
    %72 = math.rsqrt %71 : vector<8x1xf32>
    %73 = vector.broadcast %72 : vector<8x1xf32> to vector<8x32xf32>
    %74 = arith.mulf %64, %73 : vector<8x32xf32>
    %75 = vector.broadcast %57 : vector<1x32xf32> to vector<8x32xf32>
    %76 = arith.mulf %74, %75 : vector<8x32xf32>
    %77 = vector.broadcast %58 : vector<1x32xf32> to vector<8x32xf32>
    %78 = arith.addf %76, %77 : vector<8x32xf32>
    %c0_38 = arith.constant 0 : index
    %c0_39 = arith.constant 0 : index
    %79 = vector.load %arg8[%c0_38, %c0_39] : memref<8x32xf32, #tpu.memory_space<vmem>>, vector<8x32xf32>
    tpu.vector_store %arg8[%c0_38, %c0_39], %78 {strides = array<i32>} : memref<8x32xf32, #tpu.memory_space<vmem>>, vector<8x32xf32>,
    return
  }
  func.func @transform_0(%arg0: i32) -> (i32, i32) {
    %c0_i32 = arith.constant 0 : i32
    %c0_i32_0 = arith.constant 0 : i32
    return %arg0, %c0_i32 : i32, i32
  }
  func.func @transform_1(%arg0: i32) -> (i32, i32, i32) {
    %c0_i32 = arith.constant 0 : i32
    %c0_i32_0 = arith.constant 0 : i32
    %c0_i32_1 = arith.constant 0 : i32
    return %arg0, %c0_i32, %c0_i32_0 : i32, i32, i32
  }
  func.func @transform_2(%arg0: i32) -> (i32, i32) {
    %c0_i32 = arith.constant 0 : i32
    %c0_i32_0 = arith.constant 0 : i32
    %c0_i32_1 = arith.constant 0 : i32
    return %c0_i32, %c0_i32_0 : i32, i32
  }
  func.func @transform_3(%arg0: i32) -> (i32, i32) {
    %c0_i32 = arith.constant 0 : i32
    %c0_i32_0 = arith.constant 0 : i32
    %c0_i32_1 = arith.constant 0 : i32
    return %c0_i32, %c0_i32_0 : i32, i32
  }
  func.func @transform_4(%arg0: i32) -> (i32, i32) {
    %c0_i32 = arith.constant 0 : i32
    %c0_i32_0 = arith.constant 0 : i32
    return %arg0, %c0_i32 : i32, i32
  }
  func.func @transform_5(%arg0: i32) -> (i32, i32) {
    %c0_i32 = arith.constant 0 : i32
    %c0_i32_0 = arith.constant 0 : i32
    %c0_i32_1 = arith.constant 0 : i32
    return %c0_i32, %c0_i32_0 : i32, i32
  }
  func.func @transform_6(%arg0: i32) -> (i32, i32) {
    %c0_i32 = arith.constant 0 : i32
    %c0_i32_0 = arith.constant 0 : i32
    %c0_i32_1 = arith.constant 0 : i32
    return %c0_i32, %c0_i32_0 : i32, i32
  }
  func.func @transform_7(%arg0: i32) -> (i32, i32) {
    %c0_i32 = arith.constant 0 : i32
    %c0_i32_0 = arith.constant 0 : i32
    return %arg0, %c0_i32 : i32, i32
  }
}

module attributes {stable_mosaic.version = 11 : i64} {
  func.func @_ffn_kernel(%arg0: i32, %arg1: memref<16x32xf32, #tpu.memory_space<vmem>>, %arg2: memref<32x64xbf16, #tpu.memory_space<vmem>>, %arg3: memref<1x64xf32, #tpu.memory_space<vmem>>, %arg4: memref<64x32xbf16, #tpu.memory_space<vmem>>, %arg5: memref<1x32xf32, #tpu.memory_space<vmem>>, %arg6: memref<1x32xf32, #tpu.memory_space<vmem>>, %arg7: memref<1x32xf32, #tpu.memory_space<vmem>>, %arg8: memref<16x32xf32, #tpu.memory_space<vmem>>) attributes {dimension_semantics = [#tpu.dimension_semantics<parallel>], iteration_bounds = array<i64: 1>, scalar_prefetch = 0 : i64, scratch_operands = 0 : i64, tpu.core_type = #tpu.core_type<tc>, window_params = [{transform_indices = @transform_0, window_bounds = array<i64: 16, 32>}, {pipeline_mode = #tpu.pipeline_mode<synchronous>, transform_indices = @transform_1, window_bounds = array<i64: 32, 64>}, {pipeline_mode = #tpu.pipeline_mode<synchronous>, transform_indices = @transform_2, window_bounds = array<i64: 1, 64>}, {pipeline_mode = #tpu.pipeline_mode<synchronous>, transform_indices = @transform_3, window_bounds = array<i64: 64, 32>}, {pipeline_mode = #tpu.pipeline_mode<synchronous>, transform_indices = @transform_4, window_bounds = array<i64: 1, 32>}, {pipeline_mode = #tpu.pipeline_mode<synchronous>, transform_indices = @transform_5, window_bounds = array<i64: 1, 32>}, {pipeline_mode = #tpu.pipeline_mode<synchronous>, transform_indices = @transform_6, window_bounds = array<i64: 1, 32>}, {transform_indices = @transform_7, window_bounds = array<i64: 16, 32>}]} {
    %c0 = arith.constant 0 : index
    %c0_0 = arith.constant 0 : index
    %0 = vector.load %arg1[%c0, %c0_0] : memref<16x32xf32, #tpu.memory_space<vmem>>, vector<16x32xf32>
    %1 = arith.truncf %0 : vector<16x32xf32> to vector<16x32xbf16>
    %c0_1 = arith.constant 0 : index
    %c0_2 = arith.constant 0 : index
    %2 = vector.load %arg2[%c0_1, %c0_2] : memref<32x64xbf16, #tpu.memory_space<vmem>>, vector<32x64xbf16>
    %cst = arith.constant dense<0.000000e+00> : vector<16x64xf32>
    %3 = tpu.matmul %1, %2, %cst {dimension_numbers = #tpu.dot_dimension_numbers<[1], [0], [0], [1], [0, 0, 1, 1], [], []>} : vector<16x32xbf16>, vector<32x64xbf16>, vector<16x64xf32> -> vector<16x64xf32>
    %c0_3 = arith.constant 0 : index
    %c0_4 = arith.constant 0 : index
    %4 = vector.load %arg3[%c0_3, %c0_4] : memref<1x64xf32, #tpu.memory_space<vmem>>, vector<1x64xf32>
    %5 = vector.broadcast %4 : vector<1x64xf32> to vector<16x64xf32>
    %6 = arith.addf %3, %5 : vector<16x64xf32>
    %cst_5 = arith.constant 5.000000e-01 : f32
    %7 = vector.broadcast %cst_5 : f32 to vector<16x64xf32>
    %8 = arith.mulf %7, %6 : vector<16x64xf32>
    %cst_6 = arith.constant 4.471500e-02 : f32
    %9 = vector.broadcast %cst_6 : f32 to vector<16x64xf32>
    %10 = arith.mulf %9, %6 : vector<16x64xf32>
    %11 = arith.mulf %10, %6 : vector<16x64xf32>
    %12 = arith.mulf %11, %6 : vector<16x64xf32>
    %13 = arith.addf %6, %12 : vector<16x64xf32>
    %cst_7 = arith.constant 0.797884583 : f32
    %14 = vector.broadcast %cst_7 : f32 to vector<16x64xf32>
    %15 = arith.mulf %14, %13 : vector<16x64xf32>
    %16 = math.tanh %15 : vector<16x64xf32>
    %cst_8 = arith.constant 1.000000e+00 : f32
    %17 = vector.broadcast %cst_8 : f32 to vector<16x64xf32>
    %18 = arith.addf %17, %16 : vector<16x64xf32>
    %19 = arith.mulf %8, %18 : vector<16x64xf32>
    %20 = arith.truncf %19 : vector<16x64xf32> to vector<16x64xbf16>
    %c0_9 = arith.constant 0 : index
    %c0_10 = arith.constant 0 : index
    %21 = vector.load %arg4[%c0_9, %c0_10] : memref<64x32xbf16, #tpu.memory_space<vmem>>, vector<64x32xbf16>
    %cst_11 = arith.constant dense<0.000000e+00> : vector<16x32xf32>
    %22 = tpu.matmul %20, %21, %cst_11 {dimension_numbers = #tpu.dot_dimension_numbers<[1], [0], [0], [1], [0, 0, 1, 1], [], []>} : vector<16x64xbf16>, vector<64x32xbf16>, vector<16x32xf32> -> vector<16x32xf32>
    %c0_12 = arith.constant 0 : index
    %c0_13 = arith.constant 0 : index
    %23 = vector.load %arg5[%c0_12, %c0_13] : memref<1x32xf32, #tpu.memory_space<vmem>>, vector<1x32xf32>
    %24 = vector.broadcast %23 : vector<1x32xf32> to vector<16x32xf32>
    %25 = arith.addf %22, %24 : vector<16x32xf32>
    %26 = arith.addf %25, %0 : vector<16x32xf32>
    %c0_14 = arith.constant 0 : index
    %c0_15 = arith.constant 0 : index
    %27 = vector.load %arg6[%c0_14, %c0_15] : memref<1x32xf32, #tpu.memory_space<vmem>>, vector<1x32xf32>
    %c0_16 = arith.constant 0 : index
    %c0_17 = arith.constant 0 : index
    %28 = vector.load %arg7[%c0_16, %c0_17] : memref<1x32xf32, #tpu.memory_space<vmem>>, vector<1x32xf32>
    %cst_18 = arith.constant dense<0.000000e+00> : vector<16xf32>
    %29 = vector.multi_reduction <add>, %26, %cst_18 [1] : vector<16x32xf32> to vector<16xf32>
    %30 = vector.shape_cast %29 : vector<16xf32> to vector<16x1xf32>
    %cst_19 = arith.constant 3.200000e+01 : f32
    %31 = vector.broadcast %cst_19 : f32 to vector<16x1xf32>
    %32 = arith.divf %30, %31 : vector<16x1xf32>
    %33 = vector.broadcast %32 : vector<16x1xf32> to vector<16x32xf32>
    %34 = arith.subf %26, %33 : vector<16x32xf32>
    %35 = arith.mulf %34, %34 : vector<16x32xf32>
    %cst_20 = arith.constant dense<0.000000e+00> : vector<16xf32>
    %36 = vector.multi_reduction <add>, %35, %cst_20 [1] : vector<16x32xf32> to vector<16xf32>
    %37 = vector.shape_cast %36 : vector<16xf32> to vector<16x1xf32>
    %cst_21 = arith.constant 3.200000e+01 : f32
    %38 = vector.broadcast %cst_21 : f32 to vector<16x1xf32>
    %39 = arith.divf %37, %38 : vector<16x1xf32>
    %cst_22 = arith.constant 9.99999996E-13 : f32
    %40 = vector.broadcast %cst_22 : f32 to vector<16x1xf32>
    %41 = arith.addf %39, %40 : vector<16x1xf32>
    %42 = math.rsqrt %41 : vector<16x1xf32>
    %43 = vector.broadcast %42 : vector<16x1xf32> to vector<16x32xf32>
    %44 = arith.mulf %34, %43 : vector<16x32xf32>
    %45 = vector.broadcast %27 : vector<1x32xf32> to vector<16x32xf32>
    %46 = arith.mulf %44, %45 : vector<16x32xf32>
    %47 = vector.broadcast %28 : vector<1x32xf32> to vector<16x32xf32>
    %48 = arith.addf %46, %47 : vector<16x32xf32>
    %c0_23 = arith.constant 0 : index
    %c0_24 = arith.constant 0 : index
    %49 = vector.load %arg8[%c0_23, %c0_24] : memref<16x32xf32, #tpu.memory_space<vmem>>, vector<16x32xf32>
    tpu.vector_store %arg8[%c0_23, %c0_24], %48 {strides = array<i32>} : memref<16x32xf32, #tpu.memory_space<vmem>>, vector<16x32xf32>,
    return
  }
  func.func @transform_0(%arg0: i32) -> (i32, i32) {
    %c0_i32 = arith.constant 0 : i32
    %c0_i32_0 = arith.constant 0 : i32
    return %arg0, %c0_i32 : i32, i32
  }
  func.func @transform_1(%arg0: i32) -> (i32, i32) {
    %c0_i32 = arith.constant 0 : i32
    %c0_i32_0 = arith.constant 0 : i32
    %c0_i32_1 = arith.constant 0 : i32
    return %c0_i32, %c0_i32_0 : i32, i32
  }
  func.func @transform_2(%arg0: i32) -> (i32, i32) {
    %c0_i32 = arith.constant 0 : i32
    %c0_i32_0 = arith.constant 0 : i32
    %c0_i32_1 = arith.constant 0 : i32
    return %c0_i32, %c0_i32_0 : i32, i32
  }
  func.func @transform_3(%arg0: i32) -> (i32, i32) {
    %c0_i32 = arith.constant 0 : i32
    %c0_i32_0 = arith.constant 0 : i32
    %c0_i32_1 = arith.constant 0 : i32
    return %c0_i32, %c0_i32_0 : i32, i32
  }
  func.func @transform_4(%arg0: i32) -> (i32, i32) {
    %c0_i32 = arith.constant 0 : i32
    %c0_i32_0 = arith.constant 0 : i32
    %c0_i32_1 = arith.constant 0 : i32
    return %c0_i32, %c0_i32_0 : i32, i32
  }
  func.func @transform_5(%arg0: i32) -> (i32, i32) {
    %c0_i32 = arith.constant 0 : i32
    %c0_i32_0 = arith.constant 0 : i32
    %c0_i32_1 = arith.constant 0 : i32
    return %c0_i32, %c0_i32_0 : i32, i32
  }
  func.func @transform_6(%arg0: i32) -> (i32, i32) {
    %c0_i32 = arith.constant 0 : i32
    %c0_i32_0 = arith.constant 0 : i32
    %c0_i32_1 = arith.constant 0 : i32
    return %c0_i32, %c0_i32_0 : i32, i32
  }
  func.func @transform_7(%arg0: i32) -> (i32, i32) {
    %c0_i32 = arith.constant 0 : i32
    %c0_i32_0 = arith.constant 0 : i32
    return %arg0, %c0_i32 : i32, i32
  }
}

</mosaic_0001>

<bundles_post_ra>
// kernel: bert_text_encoder_forward.8
= control target key start
LH: loop header
LB: loop body
LE: loop exit
PB: predicated region body
PF: predicated region fallthrough
CT: control target
= control target key end

     0   :  { %v112_v0 = vmov 0.0   ;;  %vm113_vm0 = vmmov 0   ;;  %vm41_vm1 = vcmask 261120   ;;  %vm86_vm2 = vcmask 785408   ;;  %s155_s1 = inlined_call_operand.vmem [shape: bf16[32,96], index: 1, kind: input, shape index: {}]   ;;  %s156_s0 = inlined_call_operand.vmem [shape: f32[16,32], index: 0, kind: input, shape index: {}]   ;;  %s157_s2 = inlined_call_operand.vmem [shape: f32[1,96], index: 2, kind: input, shape index: {}]   ;;  %s158_s3 = inlined_call_operand.vmem [shape: f32[16,96], index: 3, kind: output, shape index: {}]  }
   0x1   :  { %100 = vmatprep.subr.bf16.mxu0 %v112_v0  ;;  %v110_v1 = vld [vmem:[%s155_s1] sm:$0xff]   ;;  %104 = vmatprep.mubr.msk.bf16.mxu0 %vm113_vm0, %v112_v0  ;;  %v111_v2 = vld [vmem:[%s155_s1 + $0x8] sm:$0xff]  }
   0x2   :  { %101 = vmatpush3.bf16.msra.mxu0 %v110_v1  ;;  %v15_v3 = vld [vmem:[%s156_s0] sm:$0xff]  ;;  %v16_v4 = vld [vmem:[%s156_s0 + $0x8] sm:$0xff] }
   0x3   :  { %102 = vmatprep.subr.bf16.mxu0 %v112_v0  ;;  %v17_v5 = vpack.c.bf16 %v16_v4, %v15_v3  ;;  %v93_v6 = vld [vmem:[%s157_s2] ss:$0 sm:$0xff] }
   0x6   :  { %103 = vmatpush3.bf16.msra.mxu0 %v111_v2 }
   0x9   :  { %105 = vmatmul.mubr.msk.bf16.vlgmr.msra.gmra.mrb[0].mxu0 %vm41_vm1, %v17_v5 }
  0xdc   :  { %v79_v7 = vpop.f32.mrb[0].mxu0 }
  0xdd   :  { %v80_v8 = vadd.f32 %v93_v6, %v79_v7  ;;  %v106_v9 = vpop.f32.mrb[1].mxu0 }
  0xde   :  { %v82_v10 = vpop.f32.mrb[2].mxu0 }
  0xdf   :  { %87 = vst.msk [vmem:[%s158_s3] sm:$0xff] %vm86_vm2, %v80_v8  ;;  %v83_v11 = vadd.f32 %v93_v6, %v82_v10  ;;  %v107_v12 = vpop.f32.mrb[3].mxu0 }
  0xe1   :  { %88 = vst.msk [vmem:[%s158_s3 + $0x8] sm:$0xff] %vm86_vm2, %v83_v11 }

// kernel: bert_text_encoder_forward.7
= control target key start
LH: loop header
LB: loop body
LE: loop exit
PB: predicated region body
PF: predicated region fallthrough
CT: control target
= control target key end

     0   :  { %vm18_vm0 = vcmask 261120   ;;  %s118_s0 = inlined_call_operand.vmem [shape: f32[16,32], index: 0, kind: input, shape index: {}]   ;;  %s119_s1 = inlined_call_operand.vmem [shape: f32[1,32], index: 1, kind: input, shape index: {}]   ;;  %s120_s2 = inlined_call_operand.vmem [shape: f32[1,32], index: 2, kind: input, shape index: {}]   ;;  %s121_s3 = inlined_call_operand.vmem [shape: f32[16,32], index: 3, kind: output, shape index: {}]  }
   0x1   :  { %v14_v0 = vld [vmem:[%s118_s0] sm:$0xff]  ;;  %v15_v1 = vld [vmem:[%s118_s0 + $0x8] sm:$0xff] }
   0x2   :  { %v19_v2 = vsel %vm18_vm0, %v14_v0, 0.0  ;;  %v22_v3 = vsel %vm18_vm0, %v15_v1, 0.0  ;;  %v68_v21 = vld [vmem:[%s119_s1] ss:$0 sm:$0xff] }
   0x3   :  { %20 = vadd.xlane.f32.xlu0 %v19_v2  ;;  %v69_v23 = vld [vmem:[%s120_s2] ss:$0 sm:$0xff] }
   0x7   :  { %23 = vadd.xlane.f32.xlu0 %v22_v3 }
  0x90   :  { %v21_v4 = vpop.xlane.xlu0 %20 }
  0x91   :  { %v26_v5 = vmul.f32 0.03125, %v21_v4 }
  0x93   :  { %v28_v6 = vsub.f32 %v14_v0, %v26_v5 }
  0x94   :  { %v24_v7 = vpop.xlane.xlu0 %23 }
  0x95   :  { %v27_v8 = vmul.f32 0.03125, %v24_v7  ;;  %v30_v9 = vmul.f32 %v28_v6, %v28_v6 }
  0x97   :  { %v29_v10 = vsub.f32 %v15_v1, %v27_v8  ;;  %v32_v11 = vsel %vm18_vm0, %v30_v9, 0.0 }
  0x98   :  { %33 = vadd.xlane.f32.xlu1 %v32_v11 }
  0x99   :  { %v31_v12 = vmul.f32 %v29_v10, %v29_v10 }
  0x9b   :  { %v35_v13 = vsel %vm18_vm0, %v31_v12, 0.0 }
  0x9c   :  { %36 = vadd.xlane.f32.xlu1 %v35_v13 }
 0x125   :  { %v34_v14 = vpop.xlane.xlu1 %33 }
 0x126   :  { %v38_v15 = vmul.f32 0.03125, %v34_v14 }
 0x128   :  { %v40_v16 = vadd.f32 1e-12, %v38_v15 }
 0x129   :  { %v37_v17 = vpop.xlane.xlu1 %36 }
 0x12a   :  { %70 = vrsqrt.f32 %v40_v16  ;;  %v39_v18 = vmul.f32 0.03125, %v37_v17 }
 0x12c   :  { %v41_v19 = vadd.f32 1e-12, %v39_v18 }
 0x12e   :  { %72 = vrsqrt.f32 %v41_v19 }
 0x134   :  { %v71_v20 = vpop.eup %70 }
 0x135   :  { %v44_v22 = vmul.f32 %v71_v20, %v28_v6 }
 0x137   :  { %v52_v24 = vmul.f32 %v68_v21, %v44_v22 }
 0x138   :  { %v73_v25 = vpop.eup %72 }
 0x139   :  { %v60_v26 = vadd.f32 %v69_v23, %v52_v24  ;;  %v45_v27 = vmul.f32 %v73_v25, %v29_v10 }
 0x13b   :  { %62 = vst.msk [vmem:[%s121_s3] sm:$0xff] %vm18_vm0, %v60_v26  ;;  %v53_v28 = vmul.f32 %v68_v21, %v45_v27 }
 0x13d   :  { %v61_v29 = vadd.f32 %v69_v23, %v53_v28 }
 0x13f   :  { %63 = vst.msk [vmem:[%s121_s3 + $0x8] sm:$0xff] %vm18_vm0, %v61_v29 }

// kernel: bert_text_encoder_forward.9
= control target key start
LH: loop header
LB: loop body
LE: loop exit
PB: predicated region body
PF: predicated region fallthrough
CT: control target
= control target key end

     0   :  { %s871_s24 = smov 0   ;;  %s955_s0 = inlined_call_operand.vmem [shape: f32[16,96], index: 0, kind: input, shape index: {}]   ;;  %s956_s1 = inlined_call_operand.vmem [shape: f32[2,1,8], index: 1, kind: input, shape index: {}]   ;;  %s957_s2 = inlined_call_operand.vmem [shape: bf16[32,32], index: 2, kind: input, shape index: {}]   ;;  %s958_s3 = inlined_call_operand.vmem [shape: f32[1,32], index: 3, kind: input, shape index: {}]   ;;  %s959_s4 = inlined_call_operand.vmem [shape: f32[16,32], index: 4, kind: input, shape index: {}]   ;;  %s960_s5 = inlined_call_operand.vmem [shape: f32[1,32], index: 5, kind: input, shape index: {}]   ;;  %s961_s6 = inlined_call_operand.vmem [shape: f32[1,32], index: 6, kind: input, shape index: {}]   ;;  %s962_s7 = inlined_call_operand.vmem [shape: f32[16,32], index: 7, kind: output, shape index: {}]  }
   0x1 LB: > { %s723_s25 = sadd.s32 4294967295, %s821_s24   ;;  %p727_p0 = scmp.ge.s32.totalorder %s821_s24, 1  ;;  %s821_s24 = sphi %s871_s24, %s17_s24  }
   0x2   : > { %p253_p1 = scmp.lt.s32.totalorder %s821_s24, 3 }
   0x4   : > { %p254_p2 = pnand %p727_p0, %p253_p1 }
   0x5   : > { %p290_p3 = scmp.lt.s32.totalorder (!%p254_p2), %s723_s25, 1  ;;  %v823_v0 = vmov (!%p254_p2), 0.0   ;;  %vm824_vm0 = vmmov (!%p254_p2), 0   ;;  %s825_s30 = smov (!%p254_p2), 96   ;;  %vm318_vm1 = vcmask (!%p254_p2), 130048   ;;  %vm365_vm2 = vcmask (!%p254_p2), 64512  }
   0x6   : > { %257 = sbr.rel (%p254_p2) target bundleno = 2077 (0x81d), region = 48  ;;  %755 = vmatprep.subr.bf16.mxu0 (!%p254_p2), %v823_v0  ;;  %757 = vmatprep.mubr.msk.bf16.mxu0 (!%p254_p2), %vm824_vm0, %v823_v0  ;;  %s826_s8 = smov (!%p254_p2), 64   ;;  %vm383_vm3 = vcmask (!%p254_p2), 1043456   ;;  %v803_v47 = vld [vmem:[%s957_s2] sm:$0xff] (!%p254_p2)   ;;  %v804_v48 = vld [vmem:[%s957_s2 + $0x8] sm:$0xff] (!%p254_p2)   ;;  %vm545_vm4 = vcmask (!%p254_p2), 261248  }
   0x7   : > { %761 = vmatprep.subr.bf16.mxu1 (!%p254_p2), %v823_v0  ;;  %763 = vmatprep.mubr.msk.bf16.mxu1 (!%p254_p2), %vm824_vm0, %v823_v0  ;;  %s827_s12 = smov (!%p254_p2), 80   ;;  %s828_s13 = smov (!%p254_p2), 112   ;;  %vm572_vm5 = vcmask (!%p254_p2), 261120   ;;  %v736_v56 = vld [vmem:[%s958_s3] ss:$0 sm:$0xff] (!%p254_p2) }
   0x8   : > { %s829_s14 = smov (!%p254_p2), 48   ;;  %s830_s19 = smov (!%p254_p2), 16  }
   0xd   : > { %s964_s25 = smov (!%p290_p3, %s723_s25), 1 }
   0xe   : > { %s885_s26 = sshll.u32 %s964_s25, 3  ;;  %s296_s11 = scalar_lea.vmem %s956_s1, %s964_s25 }
   0xf   : > { %s293_s29 = scalar_lea.vmem %s955_s0, %s885_s26  ;;  %v731_v5 = vld [vmem:[%s296_s11] ss:$0 sm:$0xff]  ;;  %s300_s22 = scalar_lea.vmem %s959_s4, %s885_s26 }
  0x10   : > { %v307_v1 = vld [vmem:[%s293_s29] sm:$0xff]  ;;  %s304_s10 = scalar_lea.vmem %s962_s7, %s885_s26 }
  0x11   : > { %v891_v2 = vpack.c.bf16 %v307_v1, %v307_v1  ;;  %v616_v58 = vld [vmem:[%s300_s22] sm:$0xff] }
  0x13   : > { %316 = vrot.lane.b32.xlu0 %v891_v2, %s825_s30  ;;  %378 = vrot.lane.b32.xlu1 %v891_v2, %s826_s8 }
  0x85   : > { %v317_v3 = vpop.permute.xlu0 %316  ;;  %v379_v12 = vpop.permute.xlu1 %378 }
  0x86   : > { %v323_v4 = vsel %vm318_vm1, %v317_v3, 0  ;;  %v385_v13 = vsel %vm383_vm3, %v379_v12, 0  ;;  %v741_v12 = vld [vmem:[%s961_s6] ss:$0 sm:$0xff] }
  0x87   : > { %756 = vmatpush3.bf16.xpose.msra.mxu0 %v323_v4  ;;  %762 = vmatpush3.bf16.msra.mxu1 %v385_v13 }
  0x88   : > { %773 = vmatprep.subr.bf16.mxu0 %v823_v0  ;;  %767 = vmatprep.subr.bf16.mxu1 %v823_v0 }
  0x8e   : > { %758 = vmatmul.mubr.msk.bf16.vlgmr.msra.gmra.mrb[0].mxu0 %vm318_vm1, %v891_v2 }
  0x8f   : > { %775 = vmatprep.mubr.msk.bf16.mxu0 %vm824_vm0, %v823_v0 }
 0x161   : > { %v359_v6 = vpop.f32.mrb[0].mxu0 }
 0x162   : > { %v360_v7 = vadd.f32 %v731_v5, %v359_v6  ;;  %v759_v8 = vpop.f32.mrb[1].mxu0 }
 0x163   : > { %v362_v9 = vpop.f32.mrb[2].mxu0 }
 0x164   : > { %v760_v10 = vpop.f32.mrb[3].mxu0  ;;  %v366_v11 = vsel %vm365_vm2, %v360_v7, -inf }
 0x165   : > { %367 = vmax.xlane.f32.xlu0 %v366_v11  ;;  %v740_v10 = vld [vmem:[%s960_s5] ss:$0 sm:$0xff] }
 0x1f2   : > { %v368_v14 = vpop.xlane.xlu0 %367 }
 0x1f3   : > { %v369_v15 = vsub.f32 %v360_v7, %v368_v14 }
 0x1f5   : > { %v370_v16 = vmul.f32 1.442695, %v369_v15 }
 0x1f7   : > { %805 = vpow2.f32 %v370_v16 }
 0x201   : > { %v806_v17 = vpop.eup %805 }
 0x202   : > { %v372_v18 = vsel %vm365_vm2, %v806_v17, 0.0 }
 0x203   : > { %373 = vadd.xlane.f32.xlu1 %v372_v18 }
 0x214   : > { %433 = vrot.lane.b32.xlu1 %v891_v2, %s827_s12 }
 0x218   : > { %431 = vrot.lane.b32.xlu1 %v891_v2, %s828_s13 }
 0x290   : > { %v374_v19 = vpop.xlane.xlu1 %373 }
 0x291   : > { %807 = vrcp.f32 %v374_v19 }
 0x294   : > { %v434_v21 = vpop.permute.xlu1 %433 }
 0x295   : > { %v439_v23 = vsel %vm318_vm1, %v434_v21, 0 }
 0x298   : > { %v432_v25 = vpop.permute.xlu1 %431 }
 0x29b   : > { %v808_v20 = vpop.eup %807 }
 0x29c   : > { %v376_v22 = vmul.f32 %v808_v20, %v806_v17 }
 0x29e   : > { %v377_v24 = vpack.c.bf16 %v376_v22, %v376_v22 }
 0x2a0   : > { %764 = vmatmul.mubr.msk.bf16.vlgmr.msra.gmra.mrb[0].mxu1 %vm365_vm2, %v377_v24 }
 0x2a1   : > { %768 = vmatpush3.bf16.xpose.msra.mxu1 %v439_v23  ;;  %769 = vmatprep.mubr.msk.bf16.mxu1 %vm824_vm0, %v823_v0 }
 0x2a2   : > { %779 = vmatprep.subr.bf16.mxu1 %v823_v0 }
 0x2a8   : > { %770 = vmatmul.mubr.msk.bf16.vlgmr.msra.gmra.mrb[4].mxu1 %vm318_vm1, %v432_v25 }
 0x2a9   : > { %783 = vmatprep.mubr.msk.bf16.mxu1 %vm824_vm0, %v823_v0  ;;  %780 = vmatpush3.bf16.msra.mxu1 %v803_v47 }
 0x2aa   : > { %781 = vmatprep.subr.bf16.mxu1 %v823_v0 }
 0x2ad   : > { %782 = vmatpush3.bf16.msra.mxu1 %v804_v48 }
 0x373   : > { %v421_v26 = vpop.f32.mrb[0].mxu1 }
 0x374   : > { %427 = vst.msk [vmem:[#allocation2] sm:$0xff] %vm318_vm1, %v421_v26  ;;  %v765_v27 = vpop.f32.mrb[1].mxu1 }
 0x375   : > { %v424_v28 = vpop.f32.mrb[2].mxu1 }
 0x376   : > { %v766_v29 = vpop.f32.mrb[3].mxu1 }
 0x37b   : > { %v475_v30 = vpop.f32.mrb[4].mxu1 }
 0x37c   : > { %v476_v31 = vadd.f32 %v731_v5, %v475_v30  ;;  %v771_v32 = vpop.f32.mrb[5].mxu1 }
 0x37d   : > { %v478_v33 = vpop.f32.mrb[6].mxu1 }
 0x37e   : > { %v772_v34 = vpop.f32.mrb[7].mxu1  ;;  %v481_v35 = vsel %vm365_vm2, %v476_v31, -inf }
 0x37f   : > { %482 = vmax.xlane.f32.xlu1 %v481_v35 }
 0x40c   : > { %v483_v36 = vpop.xlane.xlu1 %482 }
 0x40d   : > { %v484_v37 = vsub.f32 %v476_v31, %v483_v36 }
 0x40f   : > { %v485_v38 = vmul.f32 1.442695, %v484_v37 }
 0x411   : > { %809 = vpow2.f32 %v485_v38 }
 0x41b   : > { %v810_v39 = vpop.eup %809 }
 0x41c   : > { %v487_v40 = vsel %vm365_vm2, %v810_v39, 0.0 }
 0x41d   : > { %488 = vadd.xlane.f32.xlu0 %v487_v40 }
 0x433   : > { %493 = vrot.lane.b32.xlu0 %v891_v2, %s829_s14 }
 0x4aa   : > { %v489_v41 = vpop.xlane.xlu0 %488 }
 0x4ab   : > { %811 = vrcp.f32 %v489_v41 }
 0x4ae   : > { %v494_v42 = vpop.permute.xlu0 %493 }
 0x4af   : > { %v499_v43 = vsel %vm383_vm3, %v494_v42, 0 }
 0x4b0   : > { %774 = vmatpush3.bf16.msra.mxu0 %v499_v43 }
 0x4b5   : > { %v812_v44 = vpop.eup %811 }
 0x4b6   : > { %v491_v45 = vmul.f32 %v812_v44, %v810_v39 }
 0x4b8   : > { %v492_v46 = vpack.c.bf16 %v491_v45, %v491_v45 }
 0x4ba   : > { %776 = vmatmul.mubr.msk.bf16.vlgmr.msra.gmra.mrb[4].mxu0 %vm365_vm2, %v492_v46 }
 0x58d   : > { %v535_v49 = vpop.f32.mrb[4].mxu0 }
 0x58e   : > { %542 = vrot.lane.b32.xlu0 %v535_v49, %s830_s19  ;;  %v777_v50 = vpop.f32.mrb[5].mxu0 }
 0x58f   : > { %v538_v51 = vpop.f32.mrb[6].mxu0 }
 0x590   : > { %v778_v52 = vpop.f32.mrb[7].mxu0 }
 0x600   : > { %v543_v53 = vpop.permute.xlu0 %542 }
 0x601   : > { %546 = vst.msk [vmem:[#allocation2] sm:$0xff] %vm545_vm4, %v543_v53 }
 0x608   : > { %v547_v54 = vld [vmem:[#allocation2] sm:$0xff] }
 0x609   : > { %v548_v55 = vpack.c.bf16 %v547_v54, %v547_v54 }
 0x60b   : > { %784 = vmatmul.mubr.msk.bf16.vlgmr.msra.gmra.mrb[8].mxu1 %vm572_vm5, %v548_v55 }
 0x6de   : > { %v610_v57 = vpop.f32.mrb[8].mxu1 }
 0x6df   : > { %v611_v59 = vadd.f32 %v736_v56, %v610_v57  ;;  %v785_v60 = vpop.f32.mrb[9].mxu1 }
 0x6e0   : > { %v613_v61 = vpop.f32.mrb[10].mxu1 }
 0x6e1   : > { %v786_v62 = vpop.f32.mrb[11].mxu1  ;;  %v617_v63 = vadd.f32 %v616_v58, %v611_v59 }
 0x6e3   : > { %v620_v0 = vsel %vm572_vm5, %v617_v63, 0.0 }
 0x6e4   : > { %621 = vadd.xlane.f32.xlu0 %v620_v0 }
 0x771   : > { %v622_v1 = vpop.xlane.xlu0 %621 }
 0x772   : > { %v624_v2 = vmul.f32 0.03125, %v622_v1 }
 0x774   : > { %v625_v3 = vsub.f32 %v617_v63, %v624_v2 }
 0x776   : > { %v626_v4 = vmul.f32 %v625_v3, %v625_v3 }
 0x778   : > { %v627_v5 = vsel %vm572_vm5, %v626_v4, 0.0 }
 0x779   : > { %628 = vadd.xlane.f32.xlu1 %v627_v5 }
 0x806   : > { %v629_v6 = vpop.xlane.xlu1 %628 }
 0x807   : > { %v630_v7 = vmul.f32 0.03125, %v629_v6 }
 0x809   : > { %v631_v8 = vadd.f32 1e-12, %v630_v7 }
 0x80b   : > { %813 = vrsqrt.f32 %v631_v8 }
 0x815   : > { %v814_v9 = vpop.eup %813 }
 0x816   : > { %v633_v11 = vmul.f32 %v814_v9, %v625_v3 }
 0x818   : > { %v640_v13 = vmul.f32 %v740_v10, %v633_v11 }
 0x81a   : > { %v647_v14 = vadd.f32 %v741_v12, %v640_v13 }
 0x81c   : > { %648 = vst.msk [vmem:[%s304_s10] sm:$0xff] %vm572_vm5, %v647_v14 }
 0x81d PF: > { %s17_s24 = sadd.s32 1, %s821_s24  }
 0x81e   : > { %p14_p4 = scmp.ge.s32.totalorder %s17_s24, 4  }
 0x820   :  { %16 = sbr.rel (!%p14_p4) target bundleno = 1 (0x1), region = 84 }

// kernel: bert_text_encoder_forward.10
= control target key start
LH: loop header
LB: loop body
LE: loop exit
PB: predicated region body
PF: predicated region fallthrough
CT: control target
= control target key end

     0   :  { %v310_v0 = vmov 0.0   ;;  %vm311_vm0 = vmmov 0   ;;  %vm53_vm1 = vcmask 261120   ;;  %vm156_vm2 = vcmask 523264   ;;  %s401_s1 = inlined_call_operand.vmem [shape: bf16[32,64], index: 1, kind: input, shape index: {}]   ;;  %s402_s0 = inlined_call_operand.vmem [shape: f32[16,32], index: 0, kind: input, shape index: {}]   ;;  %s403_s3 = inlined_call_operand.vmem [shape: bf16[64,32], index: 3, kind: input, shape index: {}]   ;;  %s404_s2 = inlined_call_operand.vmem [shape: f32[1,64], index: 2, kind: input, shape index: {}]   ;;  %s405_s4 = inlined_call_operand.vmem [shape: f32[1,32], index: 4, kind: input, shape index: {}]   ;;  %s406_s5 = inlined_call_operand.vmem [shape: f32[1,32], index: 5, kind: input, shape index: {}]   ;;  %s407_s6 = inlined_call_operand.vmem [shape: f32[1,32], index: 6, kind: input, shape index: {}]   ;;  %s408_s7 = inlined_call_operand.vmem [shape: f32[16,32], index: 7, kind: output, shape index: {}]  }
   0x1   :  { %274 = vmatprep.subr.bf16.mxu0 %v310_v0  ;;  %v296_v1 = vld [vmem:[%s401_s1] sm:$0xff]   ;;  %278 = vmatprep.mubr.msk.bf16.mxu0 %vm311_vm0, %v310_v0  ;;  %v297_v2 = vld [vmem:[%s401_s1 + $0x8] sm:$0xff]   ;;  %v300_v8 = vld [vmem:[%s403_s3 + $0x10] sm:$0xff]  }
   0x2   :  { %282 = vmatprep.subr.bf16.mxu1 %v310_v0  ;;  %290 = vmatprep.mubr.msk.bf16.mxu1 %vm311_vm0, %v310_v0  ;;  %v27_v3 = vld [vmem:[%s402_s0] sm:$0xff]  ;;  %v28_v4 = vld [vmem:[%s402_s0 + $0x8] sm:$0xff]  ;;  %v301_v9 = vld [vmem:[%s403_s3 + $0x18] sm:$0xff]  }
   0x3   :  { %275 = vmatpush3.bf16.msra.mxu0 %v296_v1  ;;  %v29_v5 = vpack.c.bf16 %v28_v4, %v27_v3  ;;  %v298_v6 = vld [vmem:[%s403_s3] sm:$0xff]   ;;  %v299_v7 = vld [vmem:[%s403_s3 + $0x8] sm:$0xff]  }
   0x4   :  { %276 = vmatprep.subr.bf16.mxu0 %v310_v0  ;;  %283 = vmatpush3.bf16.msra.mxu1 %v298_v6  ;;  %v254_v10 = vld [vmem:[%s404_s2] ss:$0 sm:$0xff] }
   0x5   :  { %284 = vmatprep.subr.bf16.mxu1 %v310_v0  ;;  %v258_v36 = vld [vmem:[%s405_s4] ss:$0 sm:$0xff] }
   0x7   :  { %277 = vmatpush3.bf16.msra.mxu0 %v297_v2  ;;  %v265_v2 = vld [vmem:[%s407_s6] ss:$0 sm:$0xff] }
   0x8   :  { %285 = vmatpush3.bf16.msra.mxu1 %v299_v7 }
   0x9   :  { %286 = vmatprep.subr.bf16.mxu1 %v310_v0 }
   0xa   :  { %279 = vmatmul.mubr.msk.bf16.vlgmr.msra.gmra.mrb[0].mxu0 %vm53_vm1, %v29_v5 }
   0xc   :  { %287 = vmatpush3.bf16.msra.mxu1 %v300_v8 }
   0xd   :  { %288 = vmatprep.subr.bf16.mxu1 %v310_v0  ;;  %v264_v0 = vld [vmem:[%s406_s5] ss:$0 sm:$0xff] }
  0x10   :  { %289 = vmatpush3.bf16.msra.mxu1 %v301_v9 }
  0xdd   :  { %v91_v11 = vpop.f32.mrb[0].mxu0 }
  0xde   :  { %v92_v12 = vadd.f32 %v254_v10, %v91_v11  ;;  %v280_v13 = vpop.f32.mrb[1].mxu0 }
  0xdf   :  { %v94_v14 = vpop.f32.mrb[2].mxu0 }
  0xe0   :  { %v100_v15 = vmul.f32 0.044715, %v92_v12  ;;  %v95_v16 = vadd.f32 %v254_v10, %v94_v14  ;;  %v281_v17 = vpop.f32.mrb[3].mxu0  ;;  %v98_v30 = vmul.f32 0.5, %v92_v12 }
  0xe2   :  { %v102_v18 = vmul.f32 %v100_v15, %v92_v12  ;;  %v101_v19 = vmul.f32 0.044715, %v95_v16  ;;  %v99_v31 = vmul.f32 0.5, %v95_v16 }
  0xe4   :  { %v104_v20 = vmul.f32 %v102_v18, %v92_v12  ;;  %v103_v21 = vmul.f32 %v101_v19, %v95_v16 }
  0xe6   :  { %v106_v22 = vadd.f32 %v104_v20, %v92_v12  ;;  %v105_v23 = vmul.f32 %v103_v21, %v95_v16 }
  0xe8   :  { %v108_v24 = vmul.f32 0.7978846, %v106_v22  ;;  %v107_v25 = vadd.f32 %v105_v23, %v95_v16 }
  0xea   :  { %302 = vtanh.f32 %v108_v24  ;;  %v109_v26 = vmul.f32 0.7978846, %v107_v25 }
  0xec   :  { %304 = vtanh.f32 %v109_v26 }
  0xf4   :  { %v303_v27 = vpop.eup %302 }
  0xf5   :  { %v112_v28 = vadd.f32 1.0, %v303_v27 }
  0xf6   :  { %v305_v29 = vpop.eup %304 }
  0xf7   :  { %v113_v32 = vadd.f32 1.0, %v305_v29  ;;  %v114_v33 = vmul.f32 %v112_v28, %v98_v30 }
  0xf9   :  { %v115_v34 = vmul.f32 %v113_v32, %v99_v31 }
  0xfb   :  { %v116_v35 = vpack.c.bf16 %v115_v34, %v114_v33 }
  0xfd   :  { %291 = vmatmul.mubr.msk.bf16.vlgmr.msra.gmra.mrb[0].mxu1 %vm156_vm2, %v116_v35 }
 0x1d0   :  { %v194_v37 = vpop.f32.mrb[0].mxu1 }
 0x1d1   :  { %v195_v38 = vadd.f32 %v258_v36, %v194_v37  ;;  %v292_v39 = vpop.f32.mrb[1].mxu1 }
 0x1d2   :  { %v197_v40 = vpop.f32.mrb[2].mxu1 }
 0x1d3   :  { %v198_v41 = vadd.f32 %v258_v36, %v197_v40  ;;  %v293_v42 = vpop.f32.mrb[3].mxu1  ;;  %v201_v43 = vadd.f32 %v195_v38, %v27_v3 }
 0x1d5   :  { %v205_v44 = vsel %vm53_vm1, %v201_v43, 0.0  ;;  %v202_v45 = vadd.f32 %v198_v41, %v28_v4 }
 0x1d6   :  { %206 = vadd.xlane.f32.xlu0 %v205_v44 }
 0x1d7   :  { %v208_v46 = vsel %vm53_vm1, %v202_v45, 0.0 }
 0x1da   :  { %209 = vadd.xlane.f32.xlu0 %v208_v46 }
 0x263   :  { %v207_v47 = vpop.xlane.xlu0 %206 }
 0x264   :  { %v212_v48 = vmul.f32 0.03125, %v207_v47 }
 0x266   :  { %v214_v49 = vsub.f32 %v201_v43, %v212_v48 }
 0x267   :  { %v210_v50 = vpop.xlane.xlu0 %209 }
 0x268   :  { %v213_v51 = vmul.f32 0.03125, %v210_v50  ;;  %v216_v52 = vmul.f32 %v214_v49, %v214_v49 }
 0x26a   :  { %v215_v53 = vsub.f32 %v202_v45, %v213_v51  ;;  %v218_v54 = vsel %vm53_vm1, %v216_v52, 0.0 }
 0x26b   :  { %219 = vadd.xlane.f32.xlu1 %v218_v54 }
 0x26c   :  { %v217_v55 = vmul.f32 %v215_v53, %v215_v53 }
 0x26e   :  { %v221_v56 = vsel %vm53_vm1, %v217_v55, 0.0 }
 0x26f   :  { %222 = vadd.xlane.f32.xlu1 %v221_v56 }
 0x2f8   :  { %v220_v57 = vpop.xlane.xlu1 %219 }
 0x2f9   :  { %v224_v58 = vmul.f32 0.03125, %v220_v57 }
 0x2fb   :  { %v226_v59 = vadd.f32 1e-12, %v224_v58 }
 0x2fc   :  { %v223_v60 = vpop.xlane.xlu1 %222 }
 0x2fd   :  { %306 = vrsqrt.f32 %v226_v59  ;;  %v225_v61 = vmul.f32 0.03125, %v223_v60 }
 0x2ff   :  { %v227_v62 = vadd.f32 1e-12, %v225_v61 }
 0x301   :  { %308 = vrsqrt.f32 %v227_v62 }
 0x307   :  { %v307_v63 = vpop.eup %306 }
 0x308   :  { %v230_v1 = vmul.f32 %v307_v63, %v214_v49 }
 0x30a   :  { %v238_v3 = vmul.f32 %v264_v0, %v230_v1 }
 0x30b   :  { %v309_v4 = vpop.eup %308 }
 0x30c   :  { %v246_v5 = vadd.f32 %v265_v2, %v238_v3  ;;  %v231_v6 = vmul.f32 %v309_v4, %v215_v53 }
 0x30e   :  { %248 = vst.msk [vmem:[%s408_s7] sm:$0xff] %vm53_vm1, %v246_v5  ;;  %v239_v7 = vmul.f32 %v264_v0, %v231_v6 }
 0x310   :  { %v247_v8 = vadd.f32 %v265_v2, %v239_v7 }
 0x312   :  { %249 = vst.msk [vmem:[%s408_s7 + $0x8] sm:$0xff] %vm53_vm1, %v247_v8 }

</bundles_post_ra>
